<compile_context>
chip_gen: v7x
topology: tpu7x:2x2x1
jax: 0.10.0
libtpu: 0.0.40
codegen_flags: <defaults>
</compile_context>

<pallas_src>
import jax
import jax.numpy as jnp
from jax import lax
from jax.experimental import pallas as pl
from jax.experimental.pallas import tpu as pltpu


def _sampler_kernel(tri_ref, p_ref, u_ref, out_ref):
    # tri_ref: (A, A)  bf16 lower-triangular ones (constant block -> resident)
    # p_ref  : (TB, A) bf16 batch tile of weights (batch on sublanes)
    # u_ref  : (1, TB) f32 uniforms in [0, 1)
    # out_ref: (1, TB) i32 sampled indices (lane-dense store)
    A = tri_ref.shape[0]

    # cdf[j, b] = sum_i tri[j, i] * p[b, i]  -- contract both last dims, so the
    # "transpose" of p rides the MXU input path instead of a wrapper-side XLA
    # transpose.  bf16 x bf16 with f32 accumulation.
    cdf = lax.dot_general(
        tri_ref[...], p_ref[...],
        dimension_numbers=(((1,), (1,)), ((), ())),
        preferred_element_type=jnp.float32,
    )  # (A, TB) f32

    # Row totals taken from the SAME accumulation path (last prefix sum), so
    # u -> 1 cannot overshoot due to accumulation-order differences.
    total = cdf[A - 1:A, :]                  # (1, TB)
    thresh = u_ref[...] * total              # (1, TB), in [0, total)

    # Inverse-CDF: count buckets whose prefix sum is <= thresh (XLU reduce
    # along sublanes; result is already lane-oriented).
    idx = jnp.sum((cdf <= thresh).astype(jnp.int32), axis=0, keepdims=True)

    # All-zero rows (including zero-padded batch columns) would count every
    # bucket; clamp to a valid index.  (torch.multinomial raises on zero-total
    # rows; we cannot raise in-kernel.)
    out_ref[...] = jnp.minimum(idx, A - 1)


def multinomial_sample(p, key, *, max_batch_tile=2048, vmem_budget_bytes=24 << 20):
    """p: (batch, alphabet_size) non-negative float weights; key: jax PRNG key.
    Returns (batch, 1) int32 sampled indices, one categorical draw per row."""
    p = jnp.asarray(p)
    B, A = p.shape

    # bf16 MXU inputs.  Deliberate accuracy tradeoff: sampling is exact w.r.t.
    # the bf16-quantized weights rather than the f32 ones.  The cast fuses into
    # p's producer under jit, halving the HBM read inside the kernel.
    p_bf = p.astype(jnp.bfloat16)
    tri = jnp.tril(jnp.ones((A, A), jnp.bfloat16))   # exact in bf16

    # One uniform per row, drawn outside the kernel (works on TPU and in
    # interpret mode; draws are independent of the batch tiling below).
    u = jax.random.uniform(key, (1, B), dtype=jnp.float32)

    def tile_vmem_bytes(tb):
        return (A * A * 2                # triangle (resident, single copy)
                + 2 * tb * A * 2         # p tile, double-buffered
                + 2 * (tb * 4 + tb * 4)  # u + out tiles, double-buffered
                + A * tb * 4)            # cdf intermediate

    # Batch tiling: lane-dense output; >= 2 tiles once B >= 256 so the
    # "parallel" axis can shard across v7x's two TensorCores; tile width capped
    # by the VMEM budget and rounded to the 128-lane grain.
    if B < 256:
        tb, Bp = B, B
    else:
        half = -(-B // 2)                       # ceil(B / 2)
        tb = min(max_batch_tile, ((half + 127) // 128) * 128)
        tb = max(128, tb)
        while tb > 128 and tile_vmem_bytes(tb) > vmem_budget_bytes:
            tb = max(128, ((tb // 2) // 128) * 128)
        Bp = pl.cdiv(B, tb) * tb
        if Bp != B:
            p_bf = jnp.pad(p_bf, ((0, Bp - B), (0, 0)))
            u = jnp.pad(u, ((0, 0), (0, Bp - B)))

    # Explicit scoped-VMEM limit only when the tile estimate exceeds the
    # smallest default (16 MiB on v5e); otherwise leave the compiler default.
    est = tile_vmem_bytes(tb)
    vmem_limit = int(min(2 * est, 64 << 20)) if est > (12 << 20) else None

    cost = pl.CostEstimate(
        flops=2 * A * A * Bp,
        transcendentals=0,
        bytes_accessed=A * A * 2 + Bp * A * 2 + Bp * 4 + Bp * 4,
    )

    out = pl.pallas_call(
        _sampler_kernel,
        out_shape=jax.ShapeDtypeStruct((1, Bp), jnp.int32),
        grid_spec=pltpu.PrefetchScalarGridSpec(
            num_scalar_prefetch=0,
            grid=(Bp // tb,),
            in_specs=[
                pl.BlockSpec((A, A), lambda b: (0, 0)),    # tri: constant block -> one DMA, resident
                pl.BlockSpec((tb, A), lambda b: (b, 0)),   # p batch tile (no wrapper transpose)
                pl.BlockSpec((1, tb), lambda b: (0, b)),   # per-row uniforms
            ],
            out_specs=pl.BlockSpec((1, tb), lambda b: (0, b)),
        ),
        compiler_params=pltpu.CompilerParams(
            dimension_semantics=("parallel",),   # shard batch tiles across TCs (v7x)
            vmem_limit_bytes=vmem_limit,
        ),
        cost_estimate=cost,
    )(tri, p_bf, u)

    # Match torch.multinomial(p, num_samples=1): (batch, 1) indices.
    return out[0, :B].reshape(B, 1)


if __name__ == "__main__":
    key = jax.random.PRNGKey(0)
    batch, alphabet_size = 8, 128            # config.alphabet_size = 128
    k_logits, k_sample = jax.random.split(key)

    logits = jax.random.normal(k_logits, (batch, alphabet_size), dtype=jnp.float32)
    p = jax.nn.softmax(logits, axis=-1)      # non-negative rows

    samples = multinomial_sample(p, k_sample)
    samples = jax.block_until_ready(samples)

    assert samples.shape == (batch, 1)
    assert samples.dtype == jnp.int32
    assert bool(jnp.all((samples >= 0) & (samples < alphabet_size)))
    print("KERNEL_OK")
</pallas_src>

<mosaic_0001>
module attributes {stable_mosaic.version = 11 : i64} {
  func.func @_sampler_kernel(%arg0: i32, %arg1: memref<128x128xbf16, #tpu.memory_space<vmem>>, %arg2: memref<8x128xbf16, #tpu.memory_space<vmem>>, %arg3: memref<1x8xf32, #tpu.memory_space<vmem>>, %arg4: memref<1x8xi32, #tpu.memory_space<vmem>>) attributes {dimension_semantics = [#tpu.dimension_semantics<parallel>], iteration_bounds = array<i64: 1>, scalar_prefetch = 0 : i64, scratch_operands = 0 : i64, tpu.core_type = #tpu.core_type<tc>, window_params = [{pipeline_mode = #tpu.pipeline_mode<synchronous>, transform_indices = @transform_0, window_bounds = array<i64: 128, 128>}, {transform_indices = @transform_1, window_bounds = array<i64: 8, 128>}, {transform_indices = @transform_2, window_bounds = array<i64: 1, 8>}, {transform_indices = @transform_3, window_bounds = array<i64: 1, 8>}]} {
    %c0 = arith.constant 0 : index
    %c0_0 = arith.constant 0 : index
    %0 = vector.load %arg1[%c0, %c0_0] : memref<128x128xbf16, #tpu.memory_space<vmem>>, vector<128x128xbf16>
    %c0_1 = arith.constant 0 : index
    %c0_2 = arith.constant 0 : index
    %1 = vector.load %arg2[%c0_1, %c0_2] : memref<8x128xbf16, #tpu.memory_space<vmem>>, vector<8x128xbf16>
    %cst = arith.constant dense<0.000000e+00> : vector<128x8xf32>
    %2 = tpu.matmul %0, %1, %cst {dimension_numbers = #tpu.dot_dimension_numbers<[1], [1], [0], [0], [0, 0, 1, 0], [], []>} : vector<128x128xbf16>, vector<8x128xbf16>, vector<128x8xf32> -> vector<128x8xf32>
    %3 = vector.extract_strided_slice %2 {offsets = [127, 0], sizes = [1, 8], strides = [1, 1]} : vector<128x8xf32> to vector<1x8xf32>
    %c0_3 = arith.constant 0 : index
    %c0_4 = arith.constant 0 : index
    %4 = vector.load %arg3[%c0_3, %c0_4] : memref<1x8xf32, #tpu.memory_space<vmem>>, vector<1x8xf32>
    %5 = arith.mulf %4, %3 : vector<1x8xf32>
    %6 = vector.broadcast %5 : vector<1x8xf32> to vector<128x8xf32>
    %7 = arith.cmpf ole, %2, %6 : vector<128x8xf32>
    %8 = arith.extui %7 : vector<128x8xi1> to vector<128x8xi32>
    %cst_5 = arith.constant dense<0> : vector<8xi32>
    %9 = vector.multi_reduction <add>, %8, %cst_5 [0] : vector<128x8xi32> to vector<8xi32>
    %10 = vector.shape_cast %9 : vector<8xi32> to vector<1x8xi32>
    %c127_i32 = arith.constant 127 : i32
    %11 = vector.broadcast %c127_i32 : i32 to vector<1x8xi32>
    %12 = arith.minsi %10, %11 : vector<1x8xi32>
    %c0_6 = arith.constant 0 : index
    %c0_7 = arith.constant 0 : index
    %13 = vector.load %arg4[%c0_6, %c0_7] : memref<1x8xi32, #tpu.memory_space<vmem>>, vector<1x8xi32>
    tpu.vector_store %arg4[%c0_6, %c0_7], %12 {strides = array<i32>} : memref<1x8xi32, #tpu.memory_space<vmem>>, vector<1x8xi32>,
    return
  }
  func.func @transform_0(%arg0: i32) -> (i32, i32) {
    %c0_i32 = arith.constant 0 : i32
    %c0_i32_0 = arith.constant 0 : i32
    %c0_i32_1 = arith.constant 0 : i32
    return %c0_i32, %c0_i32_0 : i32, i32
  }
  func.func @transform_1(%arg0: i32) -> (i32, i32) {
    %c0_i32 = arith.constant 0 : i32
    %c0_i32_0 = arith.constant 0 : i32
    return %arg0, %c0_i32 : i32, i32
  }
  func.func @transform_2(%arg0: i32) -> (i32, i32) {
    %c0_i32 = arith.constant 0 : i32
    %c0_i32_0 = arith.constant 0 : i32
    return %c0_i32, %arg0 : i32, i32
  }
  func.func @transform_3(%arg0: i32) -> (i32, i32) {
    %c0_i32 = arith.constant 0 : i32
    %c0_i32_0 = arith.constant 0 : i32
    return %c0_i32, %arg0 : i32, i32
  }
}

</mosaic_0001>

<bundles_post_ra>
// kernel: tpu_custom_call.1
= control target key start
LH: loop header
LB: loop body
LE: loop exit
PB: predicated region body
PF: predicated region fallthrough
CT: control target
= control target key end

     0   :  { %8 = vsyncpa [#allocation3], 0  ;;  %s538_s0 = inlined_call_operand.hbm [shape: bf16[128,128], index: 0, kind: input, shape index: {}]   ;;  %s539_s1 = inlined_call_operand.hbm [shape: bf16[8,128], index: 1, kind: input, shape index: {}]   ;;  %s540_s2 = inlined_call_operand.vmem [shape: f32[1,8], index: 2, kind: input, shape index: {}]   ;;  %s541_s3 = inlined_call_operand.hbm [shape: s32[1,8], index: 3, kind: output, shape index: {}]  }
   0x1   :  { %9 = vsyncpa [#allocation6], 0 }
   0x2   :  { %10 = vsyncpa [#allocation4], 0  ;;  %s445_s12 = smov [#allocation2]   ;;  %s373_s16 = scalar_lea.hbm %s538_s0, 1024 }
   0x3   :  { %s16_s13 = sshll.u32 %s445_s12, 4  ;;  %p374_p0 = scmp.ne.s32.totalorder %s538_s0, %s373_s16  ;;  %s17_s13 = int_to_ptr.vmem [resolvable:$true] %s16_s13 }
   0x4   :  { %p377_p1 = scmp.lt.u32.totalorder %s373_s16, %s538_s0 }
   0x6   :  { %p379_p2 = pnand %p377_p1, %p374_p0 }
   0x8   :  { %382 = shalt.err (!%p379_p2)
}
   0x9   :  { %s383_s21 = scalar_lea.vmem %s17_s13, 1024  ;;  %p388_p4 = scmp.lt.s32.totalorder %s17_s13, %s17_s13 }
   0xa   :  { %p384_p3 = scmp.ne.s32.totalorder %s17_s13, %s383_s21  ;;  %p389_p5 = scmp.lt.s32.totalorder %s383_s21, %s383_s21 }
   0xc   :  { %p390_p6 = por %p389_p5, %p388_p4 }
   0xe   :  { %p391_p7 = pnand %p390_p6, %p384_p3 }
  0x10   :  { %394 = shalt.err (!%p391_p7)
}
  0x11   :  { %s446_s22 = smov 64   ;;  %s447_s23 = smov 4  }
  0x12   :  { %22 = dma.hbm_to_vmem [thread:$0]  %s538_s0, 1024, %s17_s13, [#allocation3], %s446_s22, %s446_s22, %s447_s23  }
  0x13   :  { %s448_s26 = smov [#allocation5]   ;;  %s395_s30 = scalar_lea.hbm %s539_s1, 64 }
  0x14   :  { %s29_s27 = sshll.u32 %s448_s26, 4  ;;  %p396_p8 = scmp.ne.s32.totalorder %s539_s1, %s395_s30  ;;  %s30_s27 = int_to_ptr.vmem [resolvable:$true] %s29_s27 }
  0x15   :  { %p399_p9 = scmp.lt.u32.totalorder %s395_s30, %s539_s1 }
  0x17   :  { %p401_p10 = pnand %p399_p9, %p396_p8 }
  0x19   :  { %404 = shalt.err (!%p401_p10)
}
  0x1a   :  { %s405_s8 = scalar_lea.vmem %s30_s27, 64  ;;  %p410_p12 = scmp.lt.s32.totalorder %s30_s27, %s30_s27 }
  0x1b   :  { %p406_p11 = scmp.ne.s32.totalorder %s30_s27, %s405_s8  ;;  %p411_p13 = scmp.lt.s32.totalorder %s405_s8, %s405_s8 }
  0x1d   :  { %p412_p0 = por %p411_p13, %p410_p12 }
  0x1f   :  { %p413_p1 = pnand %p412_p0, %p406_p11 }
  0x21   :  { %416 = shalt.err (!%p413_p1)
}
  0x22   :  { %32 = dma.hbm_to_vmem [thread:$0]  %s539_s1, 64, %s30_s27, [#allocation6]  }
  0x23   :  { %439 = dma.done.wait [#allocation3], 1024  }
  0x24   :  { %440 = vsyncadd [#allocation3], 4294966272 }
  0x25   :  { %441 = dma.done.wait [#allocation6], 64  }
  0x26   :  { %442 = vsyncadd [#allocation6], 4294967232  ;;  %v58_v0 = vld [vmem:[#allocation5] sm:$0xf]  ;;  %v366_v2 = vld [vmem:[#allocation2 + $0x28] sm:$0xff]   ;;  %v210_v14 = vlaneseq  ;;  %vm263_vm0 = vcmask 64512  }
  0x27   :  { %356 = vmatprep.subr.bf16.mxu1 %v58_v0  ;;  %v365_v1 = vld [vmem:[#allocation2 + $0x20] sm:$0xff]   ;;  %338 = vmatprep.subr.bf16.mxu0 %v58_v0  ;;  %v367_v3 = vld [vmem:[#allocation2 + $0x30] sm:$0xff]   ;;  %v370_v5 = vld [vmem:[#allocation2 + $0x8] sm:$0xff]   ;;  %v449_v12 = vmov 1966171168   ;;  %v450_v40 = vmov 0  }
  0x28   :  { %357 = vmatpush3.bf16.xpose.msra.mxu1 %v58_v0  ;;  %339 = vmatpush3.bf16.xpose.msra.mxu0 %v58_v0  ;;  %v369_v4 = vld [vmem:[#allocation2] sm:$0xff]   ;;  %v371_v6 = vld [vmem:[#allocation2 + $0x10] sm:$0xff]   ;;  %v368_v7 = vld [vmem:[#allocation2 + $0x38] sm:$0xff]   ;;  %v208_v13 = vunpack.c.l.s4 %v449_v12  ;;  %v211_v21 = vshrl.u32 %v210_v14, 7 }
  0x29   :  { %348 = vmatprep.mubr.bf16.mxu1 %v365_v1  ;;  %340 = vmatprep.mubr.bf16.mxu0 %v369_v4  ;;  %v372_v8 = vld [vmem:[#allocation2 + $0x18] sm:$0xff]   ;;  %v204_v35 = vld [vmem:[%s540_s2] sm:$0x1]  ;;  %s451_s2 = smov [#allocation7]  }
  0x2a   :  { %v209_v20 = vunpack.c.0.s8 %v208_v13  ;;  %v228_v37 = vsub.s32 0, %v211_v21  ;;  %s311_s11 = sshll.u32 %s451_s2, 4  ;;  %s312_s11 = int_to_ptr.vmem [resolvable:$true] %s311_s11 }
  0x2b   :  { %s417_s12 = scalar_lea.vmem %s312_s11, 16  ;;  %s421_s13 = scalar_lea.vmem %s312_s11, 32 }
  0x2c   :  { %v212_v25 = vsub.s32 %v209_v20, %v211_v21  ;;  %p418_p2 = scmp.ne.s32.totalorder %s312_s11, %s417_s12  ;;  %p422_p3 = scmp.lt.s32.totalorder %s312_s11, %s312_s11 }
  0x2d   :  { %p423_p4 = scmp.lt.s32.totalorder %s421_s13, %s417_s12 }
  0x2f   :  { %349 = vmatmul.mubr.bf16.vlgmr.msra.gmra.mrb[0].mxu1 %v366_v2  ;;  %341 = vmatmul.mubr.bf16.vlgmr.msra.gmra.mrb[0].mxu0 %v370_v5  ;;  %p424_p5 = por %p423_p4, %p422_p3 }
  0x30   :  { %352 = vmatprep.mubr.bf16.mxu1 %v367_v3  ;;  %344 = vmatprep.mubr.bf16.mxu0 %v371_v6 }
  0x31   :  { %p425_p6 = pnand %p424_p5, %p418_p2 }
  0x37   :  { %353 = vmatmul.mubr.bf16.gmra.mrb[4].mxu1 %v368_v7  ;;  %345 = vmatmul.mubr.bf16.gmra.mrb[4].mxu0 %v372_v8 }
 0x102   :  { %v350_v9 = vpop.f32.mrb[0].mxu1  ;;  %v342_v10 = vpop.f32.mrb[0].mxu0 }
 0x103   :  { %v173_v11 = vpop.f32.mrb[1].mxu1  ;;  %v141_v15 = vpop.f32.mrb[1].mxu0 }
 0x104   :  { %v496_v16 = vpop.f32.mrb[2].mxu1  ;;  %v343_v17 = vpop.f32.mrb[2].mxu0 }
 0x105   :  { %v498_v18 = vpop.f32.mrb[3].mxu1  ;;  %v144_v19 = vpop.f32.mrb[3].mxu0 }
 0x10a   :  { %v354_v22 = vpop.f32.mrb[4].mxu1  ;;  %v346_v23 = vpop.f32.mrb[4].mxu0 }
 0x10b   :  { %v189_v24 = vpop.f32.mrb[5].mxu1  ;;  %v157_v26 = vpop.f32.mrb[5].mxu0 }
 0x10c   :  { %v355_v27 = vpop.f32.mrb[6].mxu1  ;;  %v347_v28 = vpop.f32.mrb[6].mxu0 }
 0x10d   :  { %v206_v29 = vcombine.high %v355_v27, %v355_v27  ;;  %v500_v30 = vpop.f32.mrb[7].mxu1  ;;  %v160_v31 = vpop.f32.mrb[7].mxu0 }
 0x10f   :  { %v213_v32 = vrot.slane %v206_v29, %v212_v25 }
 0x111   :  { %v214_v33 = vcombine.high %v213_v32, %v213_v32 }
 0x113   :  { %v221_v34 = vrot.slane %v214_v33, %v212_v25 }
 0x115   :  { %v222_v36 = vcombine.high %v221_v34, %v221_v34 }
 0x117   :  { %v224_v38 = vmul.f32 %v222_v36, %v204_v35 }
 0x119   :  { %v229_v39 = vrot.slane %v224_v38, %v228_v37 }
 0x11b   :  { %vm246_vm1 = vcmp.le.f32.partialorder %v355_v27, %v229_v39  ;;  %vm231_vm2 = vcmp.le.f32.partialorder %v141_v15, %v229_v39  ;;  %vm244_vm3 = vcmp.le.f32.partialorder %v500_v30, %v229_v39  ;;  %vm234_vm4 = vcmp.le.f32.partialorder %v343_v17, %v229_v39 }
 0x11c   :  { %v247_v41 = vsel %vm231_vm2, 1, %v450_v40  ;;  %v262_v42 = vsel %vm246_vm1, 1, %v450_v40  ;;  %v250_v44 = vsel %vm234_vm4, 1, %v450_v40  ;;  %vm232_vm5 = vcmp.le.f32.partialorder %v144_v19, %v229_v39 }
 0x11d   :  { %v264_v43 = vsel %vm263_vm0, %v247_v41, 0  ;;  %vm233_vm6 = vcmp.le.f32.partialorder %v342_v10, %v229_v39  ;;  %vm237_vm7 = vcmp.le.f32.partialorder %v346_v23, %v229_v39  ;;  %vm241_vm8 = vcmp.le.f32.partialorder %v350_v9, %v229_v39 }
 0x11e   :  { %v248_v45 = vsel %vm232_vm5, 1, %v450_v40  ;;  %vm245_vm9 = vcmp.le.f32.partialorder %v354_v22, %v229_v39  ;;  %v249_v46 = vsel %vm233_vm6, 1, %v450_v40  ;;  %v253_v47 = vsel %vm237_vm7, 1, %v450_v40 }
 0x11f   :  { %v267_v48 = vsel %vm263_vm0, %v250_v44, 0  ;;  %v257_v49 = vsel %vm241_vm8, 1, %v450_v40  ;;  %v261_v50 = vsel %vm245_vm9, 1, %v450_v40  ;;  %v266_v51 = vsel %vm263_vm0, %v249_v46, 0 }
 0x120   :  { %v265_v52 = vsel %vm263_vm0, %v248_v45, 0  ;;  %v272_v53 = vsel %vm263_vm0, %v253_v47, 0  ;;  %v280_v54 = vsel %vm263_vm0, %v257_v49, 0  ;;  %vm235_vm10 = vcmp.le.f32.partialorder %v157_v26, %v229_v39 }
 0x121   :  { %v273_v55 = vadd.s32 %v272_v53, %v266_v51  ;;  %vm239_vm11 = vcmp.le.f32.partialorder %v173_v11, %v229_v39  ;;  %vm243_vm12 = vcmp.le.f32.partialorder %v189_v24, %v229_v39  ;;  %v251_v56 = vsel %vm235_vm10, 1, %v450_v40 }
 0x122   :  { %v288_v57 = vsel %vm263_vm0, %v261_v50, 0  ;;  %v255_v58 = vsel %vm239_vm11, 1, %v450_v40  ;;  %v268_v59 = vsel %vm263_vm0, %v251_v56, 0  ;;  %vm238_vm13 = vcmp.le.f32.partialorder %v347_v28, %v229_v39 }
 0x123   :  { %v281_v60 = vadd.s32 %v280_v54, %v273_v55  ;;  %v259_v61 = vsel %vm243_vm12, 1, %v450_v40  ;;  %v269_v62 = vadd.s32 %v268_v59, %v264_v43  ;;  %v276_v63 = vsel %vm263_vm0, %v255_v58, 0 }
 0x124   :  { %vm242_vm14 = vcmp.le.f32.partialorder %v496_v16, %v229_v39  ;;  %v254_v0 = vsel %vm238_vm13, 1, %v450_v40  ;;  %vm236_vm15 = vcmp.le.f32.partialorder %v160_v31, %v229_v39  ;;  %vm240_vm1 = vcmp.le.f32.partialorder %v498_v18, %v229_v39 }
 0x125   :  { %v289_v1 = vadd.s32 %v288_v57, %v281_v60  ;;  %v277_v2 = vadd.s32 %v276_v63, %v269_v62  ;;  %v258_v3 = vsel %vm242_vm14, 1, %v450_v40  ;;  %v274_v4 = vsel %vm263_vm0, %v254_v0, 0 }
 0x126   :  { %v284_v5 = vsel %vm263_vm0, %v259_v61, 0  ;;  %v275_v6 = vadd.s32 %v274_v4, %v267_v48  ;;  %v252_v7 = vsel %vm236_vm15, 1, %v450_v40  ;;  %v256_v8 = vsel %vm240_vm1, 1, %v450_v40 }
 0x127   :  { %v285_v9 = vadd.s32 %v284_v5, %v277_v2  ;;  %v282_v10 = vsel %vm263_vm0, %v258_v3, 0  ;;  %v270_v11 = vsel %vm263_vm0, %v252_v7, 0  ;;  %v260_v12 = vsel %vm244_vm3, 1, %v450_v40 }
 0x128   :  { %v283_v13 = vadd.s32 %v282_v10, %v275_v6  ;;  %v271_v14 = vadd.s32 %v270_v11, %v265_v52  ;;  %v290_v15 = vsel %vm263_vm0, %v262_v42, 0  ;;  %v278_v16 = vsel %vm263_vm0, %v256_v8, 0 }
 0x129   :  { %v286_v19 = vsel %vm263_vm0, %v260_v12, 0  ;;  %vm303_vm2 = vcmask 57344  }
 0x12a   :  { %v291_v17 = vadd.s32 %v290_v15, %v283_v13  ;;  %v279_v18 = vadd.s32 %v278_v16, %v271_v14 }
 0x12c   :  { %v293_v20 = vadd.s32 %v291_v17, %v289_v1  ;;  %v287_v21 = vadd.s32 %v286_v19, %v279_v18 }
 0x12e   :  { %v292_v22 = vadd.s32 %v287_v21, %v285_v9 }
 0x130   :  { %v294_v23 = vadd.s32 %v293_v20, %v292_v22 }
 0x132   :  { %v295_v24 = vrot.slane %v294_v23, 4 }
 0x134   :  { %v296_v25 = vadd.s32 %v295_v24, %v294_v23 }
 0x136   :  { %v297_v26 = vrot.slane %v296_v25, 2 }
 0x138   :  { %v298_v27 = vadd.s32 %v297_v26, %v296_v25 }
 0x13a   :  { %v299_v28 = vrot.slane %v298_v27, 1 }
 0x13c   :  { %v300_v29 = vadd.s32 %v299_v28, %v298_v27 }
 0x13e   :  { %vm301_vm3 = vcmp.lt.s32.totalorder %v300_v29, 127 }
 0x13f   :  { %v302_v30 = vsel %vm301_vm3, %v300_v29, 127 }
 0x140   :  { %304 = vst.msk [vmem:[#allocation7] sm:$0x1] %vm303_vm2, %v302_v30 }
 0x141   :  { %428 = shalt.err (!%p425_p6)
}
 0x142   :  { %s429_s16 = scalar_lea.hbm %s541_s3, 16 }
 0x143   :  { %p430_p7 = scmp.ne.s32.totalorder %s541_s3, %s429_s16  ;;  %p433_p8 = scmp.lt.u32.totalorder %s429_s16, %s541_s3 }
 0x145   :  { %p435_p9 = pnand %p433_p8, %p430_p7 }
 0x147   :  { %438 = shalt.err (!%p435_p9)
}
 0x148   :  { %314 = dma.vmem_to_hbm [thread:$0]  %s312_s11, 16, %s541_s3, [#allocation4]  }
 0x149   :  { %443 = dma.done.wait [#allocation4], 16  }
 0x14a   :  { %444 = vsyncadd [#allocation4], 4294967280 }
 0x14b   :  { %318 = vsyncpa [#allocation3], 1 }
 0x14c   :  { %319 = vsyncpa [#allocation6], 1 }
 0x14d   :  { %320 = vsyncpa [#allocation4], 1 }

</bundles_post_ra>
